<compile_context>
chip_gen: v5e
topology: v5e:2x2
jax: 0.10.0
libtpu: 0.0.40
codegen_flags: <defaults>
</compile_context>

<pallas_src>
import functools

import jax
import jax.numpy as jnp
from jax import lax
from jax.experimental import pallas as pl
from jax.experimental.pallas import tpu as pltpu

HIDDEN = 128
NCLASS = 13
CLS_PAD = 128          # lane-dense padded class dimension (multiple of 128)
MAX_T_TILE = 128       # per-grid-step timesteps (amortizes pipeline overhead)
LOOP_UNROLL = 8        # partial unroll of the recurrence fori_loop


def _round_up(x, m):
    return ((x + m - 1) // m) * m


def _rnn_kernel(x_ref, h0_ref, wih_ref, whh_ref, b_ref, wo_ref, bo_ref,
                probs_ref, hout_ref, h_scratch, a_scratch,
                *, t_total, needs_mask, unroll):
    # x_ref:   (B_TILE, T_TILE, D) batch-first tile of the input (pipelined DMA)
    # h0_ref:  (B_TILE, H)         initial hidden state for this batch tile
    # wih_ref: (D, H), whh_ref: (H, H)   (transposed from torch layout)
    # b_ref:   (1, H)              b_ih + b_hh
    # wo_ref:  (H, CLS_PAD) zero-padded, bo_ref: (1, CLS_PAD) padded with -1e30
    # probs_ref: (B_TILE, CLS_PAD), hout_ref: (B_TILE, H)
    # h_scratch: (B_TILE, H) f32   hidden-state carry across time grid steps
    # a_scratch: (T_TILE, B_TILE, H) f32  time-major staged input projection
    b_tile, t_tile, d = x_ref.shape
    t_idx = pl.program_id(1)

    @pl.when(t_idx == 0)
    def _init():
        h_scratch[...] = h0_ref[...].astype(jnp.float32)

    # --- Hoisted input projection: one MXU matmul for the whole tile, then staged
    #     time-major into VMEM scratch (per-step read is off the serial chain). ---
    x_flat = x_ref[...].reshape(b_tile * t_tile, d)
    a_x = jnp.dot(x_flat, wih_ref[...], preferred_element_type=jnp.float32) + b_ref[...]
    a_scratch[...] = jnp.transpose(a_x.reshape(b_tile, t_tile, HIDDEN), (1, 0, 2))

    # --- Serial recurrence: h = tanh(a_x[t] + h @ W_hh), W_hh loop-invariant. ---
    whh = whh_ref[...]
    t_base = t_idx * t_tile

    def step(t, h):
        a_t = a_scratch[t]                              # (B_TILE, H) leading-axis vld
        h_new = jnp.tanh(a_t + jnp.dot(h.astype(whh.dtype), whh,
                                       preferred_element_type=jnp.float32))
        if needs_mask:                                  # static: only if T was padded
            h_new = jnp.where(t_base + t < t_total, h_new, h)
        return h_new

    h = lax.fori_loop(0, t_tile, step, h_scratch[...], unroll=unroll)
    h_scratch[...] = h

    @pl.when(t_idx == pl.num_programs(1) - 1)
    def _finalize():
        hout_ref[...] = h.astype(hout_ref.dtype)
        # r_out[:, -1, :] == final hidden state; Linear(128, 13) + softmax(dim=1).
        logits = jnp.dot(h.astype(wo_ref.dtype), wo_ref[...],
                         preferred_element_type=jnp.float32) + bo_ref[...]
        m = jnp.max(logits, axis=-1, keepdims=True)
        e = jnp.exp(logits - m)                         # padded cols: exp(-1e30-m)==0
        probs_ref[...] = (e / jnp.sum(e, axis=-1, keepdims=True)).astype(probs_ref.dtype)


def rnn_forward(x, h_state, params, *, t_tile=None, use_bf16=False):
    """x: (B, T, D) batch_first, h_state: (1, B, H). Returns (probs (B,13), h_next (1,B,H))."""
    B, T, D = x.shape
    h0 = h_state[0]                                     # (B, H)

    # --- batch padding: fill sublanes (>=8 rows); large batches tiled by 64 ---
    b_pad = _round_up(max(B, 8), 8)
    if b_pad > 64:
        b_tile = 64
        b_pad = _round_up(b_pad, 64)
    else:
        b_tile = b_pad

    # --- time tiling: t_tile multiple of 8; pad T to a multiple (masked in-kernel) ---
    if t_tile is None:
        t_tile = min(MAX_T_TILE, _round_up(T, 8))
    t_tile = _round_up(t_tile, 8)
    t_pad = _round_up(T, t_tile)
    needs_mask = (t_pad != T)
    unroll = min(LOOP_UNROLL, t_tile)

    cdt = jnp.bfloat16 if use_bf16 else jnp.float32     # matmul operand dtype

    x_p = jnp.pad(x, ((0, b_pad - B), (0, t_pad - T), (0, 0))).astype(cdt)
    h0_p = jnp.pad(h0, ((0, b_pad - B), (0, 0))).astype(jnp.float32)

    w_ih = params["w_ih"].T.astype(cdt)                 # (D, H)
    w_hh = params["w_hh"].T.astype(cdt)                 # (H, H)
    b = (params["b_ih"] + params["b_hh"]).reshape(1, HIDDEN).astype(jnp.float32)
    # Lane-dense head: zero-pad weight cols; -1e30-pad bias cols (kept f32) so the
    # softmax denominator only sees the 13 real classes.
    w_out = (jnp.zeros((HIDDEN, CLS_PAD), jnp.float32)
             .at[:, :NCLASS].set(params["w_out"].T).astype(cdt))
    b_out = jnp.full((1, CLS_PAD), -1e30, jnp.float32).at[0, :NCLASS].set(params["b_out"])

    grid = (b_pad // b_tile, t_pad // t_tile)

    # VMEM budget: x double-buffer + time-major a_x scratch + weights + outputs.
    isz = 2 if use_bf16 else 4
    needed = (2 * b_tile * t_tile * D * isz
              + t_tile * b_tile * HIDDEN * 4
              + b_tile * HIDDEN * 4
              + 2 * (D + HIDDEN + CLS_PAD) * HIDDEN * isz
              + 2 * b_tile * (CLS_PAD + HIDDEN) * 4)
    vmem_limit = int(min(128 << 20, max(32 << 20, 2 * needed)))

    kernel = functools.partial(_rnn_kernel, t_total=T,
                               needs_mask=needs_mask, unroll=unroll)

    probs_pad, h_next = pl.pallas_call(
        kernel,
        out_shape=(
            jax.ShapeDtypeStruct((b_pad, CLS_PAD), jnp.float32),
            jax.ShapeDtypeStruct((b_pad, HIDDEN), jnp.float32),
        ),
        grid_spec=pltpu.PrefetchScalarGridSpec(
            num_scalar_prefetch=0,
            grid=grid,
            in_specs=[
                pl.BlockSpec((b_tile, t_tile, D), lambda bi, ti: (bi, ti, 0)),  # x (streamed)
                pl.BlockSpec((b_tile, HIDDEN), lambda bi, ti: (bi, 0)),         # h0
                pl.BlockSpec((D, HIDDEN), lambda bi, ti: (0, 0)),               # w_ih
                pl.BlockSpec((HIDDEN, HIDDEN), lambda bi, ti: (0, 0)),          # w_hh
                pl.BlockSpec((1, HIDDEN), lambda bi, ti: (0, 0)),               # b
                pl.BlockSpec((HIDDEN, CLS_PAD), lambda bi, ti: (0, 0)),         # w_out
                pl.BlockSpec((1, CLS_PAD), lambda bi, ti: (0, 0)),              # b_out
            ],
            out_specs=(
                pl.BlockSpec((b_tile, CLS_PAD), lambda bi, ti: (bi, 0)),        # probs
                pl.BlockSpec((b_tile, HIDDEN), lambda bi, ti: (bi, 0)),         # h_next
            ),
            scratch_shapes=[
                pltpu.VMEM((b_tile, HIDDEN), jnp.float32),           # hidden-state carry
                pltpu.VMEM((t_tile, b_tile, HIDDEN), jnp.float32),   # time-major a_x
            ],
        ),
        compiler_params=pltpu.CompilerParams(
            # Batch tiles are independent (megacore-shardable); time is a serial
            # recurrence and MUST be "arbitrary".
            dimension_semantics=("parallel", "arbitrary"),
            vmem_limit_bytes=vmem_limit,
        ),
    )(x_p, h0_p, w_ih, w_hh, b, w_out, b_out)

    return probs_pad[:B, :NCLASS], h_next[:B][None]     # h_next: (1, B, H) like torch


def _reference(x, h_state, params):
    """Pure-JAX reference matching PyTorch nn.RNN + Linear + Softmax."""
    h = h_state[0]
    T = x.shape[1]
    for t in range(T):
        h = jnp.tanh(x[:, t, :] @ params["w_ih"].T + params["b_ih"]
                     + h @ params["w_hh"].T + params["b_hh"])
    logits = h @ params["w_out"].T + params["b_out"]
    return jax.nn.softmax(logits, axis=1), h[None]


def init_params(key, input_size):
    # Same shapes as PyTorch: weight_ih_l0 (H, D), weight_hh_l0 (H, H),
    # bias_ih_l0 (H,), bias_hh_l0 (H,), out1.weight (C, H), out1.bias (C,).
    ks = jax.random.split(key, 6)
    bound = 1.0 / jnp.sqrt(HIDDEN)
    return {
        "w_ih": jax.random.uniform(ks[0], (HIDDEN, input_size), jnp.float32, -bound, bound),
        "w_hh": jax.random.uniform(ks[1], (HIDDEN, HIDDEN), jnp.float32, -bound, bound),
        "b_ih": jax.random.uniform(ks[2], (HIDDEN,), jnp.float32, -bound, bound),
        "b_hh": jax.random.uniform(ks[3], (HIDDEN,), jnp.float32, -bound, bound),
        "w_out": jax.random.uniform(ks[4], (NCLASS, HIDDEN), jnp.float32, -bound, bound),
        "b_out": jax.random.uniform(ks[5], (NCLASS,), jnp.float32, -bound, bound),
    }


if __name__ == "__main__":
    key = jax.random.PRNGKey(0)
    k_x, k_h, k_p = jax.random.split(key, 3)

    B, T, D = 2, 8, 32
    x = jax.random.normal(k_x, (B, T, D), jnp.float32)
    h_state = jax.random.normal(k_h, (1, B, HIDDEN), jnp.float32)
    params = init_params(k_p, D)

    probs, h_next = jax.jit(rnn_forward)(x, h_state, params)
    jax.block_until_ready((probs, h_next))

    ref_probs, ref_h = _reference(x, h_state, params)
    assert probs.shape == (B, NCLASS) and h_next.shape == (1, B, HIDDEN)
    assert jnp.allclose(probs, ref_probs, atol=5e-5, rtol=5e-5), \
        float(jnp.max(jnp.abs(probs - ref_probs)))
    assert jnp.allclose(h_next, ref_h, atol=5e-5, rtol=5e-5), \
        float(jnp.max(jnp.abs(h_next - ref_h)))

    print("KERNEL_OK")
</pallas_src>

<mosaic_0001>
module attributes {stable_mosaic.version = 11 : i64} {
  func.func @_rnn_kernel(%arg0: i32, %arg1: i32, %arg2: memref<8x8x32xf32, #tpu.memory_space<vmem>>, %arg3: memref<8x128xf32, #tpu.memory_space<vmem>>, %arg4: memref<32x128xf32, #tpu.memory_space<vmem>>, %arg5: memref<128x128xf32, #tpu.memory_space<vmem>>, %arg6: memref<1x128xf32, #tpu.memory_space<vmem>>, %arg7: memref<128x128xf32, #tpu.memory_space<vmem>>, %arg8: memref<1x128xf32, #tpu.memory_space<vmem>>, %arg9: memref<8x128xf32, #tpu.memory_space<vmem>>, %arg10: memref<8x128xf32, #tpu.memory_space<vmem>>, %arg11: memref<8x128xf32, #tpu.memory_space<vmem>>, %arg12: memref<8x8x128xf32, #tpu.memory_space<vmem>>) attributes {dimension_semantics = [#tpu.dimension_semantics<parallel>, #tpu.dimension_semantics<arbitrary>], iteration_bounds = array<i64: 1, 1>, scalar_prefetch = 0 : i64, scratch_operands = 2 : i64, tpu.core_type = #tpu.core_type<tc>, window_params = [{transform_indices = @transform_0, window_bounds = array<i64: 8, 8, 32>}, {transform_indices = @transform_1, window_bounds = array<i64: 8, 128>}, {pipeline_mode = #tpu.pipeline_mode<synchronous>, transform_indices = @transform_2, window_bounds = array<i64: 32, 128>}, {pipeline_mode = #tpu.pipeline_mode<synchronous>, transform_indices = @transform_3, window_bounds = array<i64: 128, 128>}, {pipeline_mode = #tpu.pipeline_mode<synchronous>, transform_indices = @transform_4, window_bounds = array<i64: 1, 128>}, {pipeline_mode = #tpu.pipeline_mode<synchronous>, transform_indices = @transform_5, window_bounds = array<i64: 128, 128>}, {pipeline_mode = #tpu.pipeline_mode<synchronous>, transform_indices = @transform_6, window_bounds = array<i64: 1, 128>}, {transform_indices = @transform_7, window_bounds = array<i64: 8, 128>}, {transform_indices = @transform_8, window_bounds = array<i64: 8, 128>}]} {
    %c0_i32 = arith.constant 0 : i32
    %0 = arith.cmpi eq, %arg1, %c0_i32 : i32
    %1 = arith.extui %0 : i1 to i32
    %c0_i32_0 = arith.constant 0 : i32
    %2 = arith.cmpi ne, %1, %c0_i32_0 : i32
    scf.if %2 {
      %c0_43 = arith.constant 0 : index
      %c0_44 = arith.constant 0 : index
      %67 = vector.load %arg3[%c0_43, %c0_44] : memref<8x128xf32, #tpu.memory_space<vmem>>, vector<8x128xf32>
      %c0_45 = arith.constant 0 : index
      %c0_46 = arith.constant 0 : index
      %68 = vector.load %arg11[%c0_45, %c0_46] : memref<8x128xf32, #tpu.memory_space<vmem>>, vector<8x128xf32>
      tpu.vector_store %arg11[%c0_45, %c0_46], %67 {strides = array<i32>} : memref<8x128xf32, #tpu.memory_space<vmem>>, vector<8x128xf32>,
    } else {
    }
    %c0 = arith.constant 0 : index
    %c0_1 = arith.constant 0 : index
    %c0_2 = arith.constant 0 : index
    %3 = vector.load %arg2[%c0, %c0_1, %c0_2] : memref<8x8x32xf32, #tpu.memory_space<vmem>>, vector<8x8x32xf32>
    %4 = vector.shape_cast %3 : vector<8x8x32xf32> to vector<64x32xf32>
    %c0_3 = arith.constant 0 : index
    %c0_4 = arith.constant 0 : index
    %5 = vector.load %arg4[%c0_3, %c0_4] : memref<32x128xf32, #tpu.memory_space<vmem>>, vector<32x128xf32>
    %cst = arith.constant dense<0.000000e+00> : vector<64x128xf32>
    %6 = tpu.matmul %4, %5, %cst {dimension_numbers = #tpu.dot_dimension_numbers<[1], [0], [0], [1], [0, 0, 1, 1], [], []>} : vector<64x32xf32>, vector<32x128xf32>, vector<64x128xf32> -> vector<64x128xf32>
    %c0_5 = arith.constant 0 : index
    %c0_6 = arith.constant 0 : index
    %7 = vector.load %arg6[%c0_5, %c0_6] : memref<1x128xf32, #tpu.memory_space<vmem>>, vector<1x128xf32>
    %8 = vector.broadcast %7 : vector<1x128xf32> to vector<64x128xf32>
    %9 = arith.addf %6, %8 : vector<64x128xf32>
    %10 = vector.shape_cast %9 : vector<64x128xf32> to vector<8x8x128xf32>
    %11 = tpu.transpose %10, [1, 0, 2] : vector<8x8x128xf32> -> vector<8x8x128xf32>
    %c0_7 = arith.constant 0 : index
    %c0_8 = arith.constant 0 : index
    %c0_9 = arith.constant 0 : index
    %12 = vector.load %arg12[%c0_7, %c0_8, %c0_9] : memref<8x8x128xf32, #tpu.memory_space<vmem>>, vector<8x8x128xf32>
    tpu.vector_store %arg12[%c0_7, %c0_8, %c0_9], %11 {strides = array<i32>} : memref<8x8x128xf32, #tpu.memory_space<vmem>>, vector<8x8x128xf32>,
    %c0_10 = arith.constant 0 : index
    %c0_11 = arith.constant 0 : index
    %13 = vector.load %arg5[%c0_10, %c0_11] : memref<128x128xf32, #tpu.memory_space<vmem>>, vector<128x128xf32>
    %c0_12 = arith.constant 0 : index
    %c0_13 = arith.constant 0 : index
    %14 = vector.load %arg11[%c0_12, %c0_13] : memref<8x128xf32, #tpu.memory_space<vmem>>, vector<8x128xf32>
    %c0_i32_14 = arith.constant 0 : i32
    %15 = arith.index_cast %c0_i32_14 : i32 to index
    %c0_15 = arith.constant 0 : index
    %c0_16 = arith.constant 0 : index
    %16 = vector.load %arg12[%15, %c0_15, %c0_16] : memref<8x8x128xf32, #tpu.memory_space<vmem>>, vector<1x8x128xf32>
    %17 = vector.shape_cast %16 : vector<1x8x128xf32> to vector<8x128xf32>
    %cst_17 = arith.constant dense<0.000000e+00> : vector<8x128xf32>
    %18 = tpu.matmul %14, %13, %cst_17 {dimension_numbers = #tpu.dot_dimension_numbers<[1], [0], [0], [1], [0, 0, 1, 1], [], []>} : vector<8x128xf32>, vector<128x128xf32>, vector<8x128xf32> -> vector<8x128xf32>
    %19 = arith.addf %17, %18 : vector<8x128xf32>
    %20 = math.tanh %19 : vector<8x128xf32>
    %c1_i32 = arith.constant 1 : i32
    %21 = arith.index_cast %c1_i32 : i32 to index
    %c0_18 = arith.constant 0 : index
    %c0_19 = arith.constant 0 : index
    %22 = vector.load %arg12[%21, %c0_18, %c0_19] : memref<8x8x128xf32, #tpu.memory_space<vmem>>, vector<1x8x128xf32>
    %23 = vector.shape_cast %22 : vector<1x8x128xf32> to vector<8x128xf32>
    %cst_20 = arith.constant dense<0.000000e+00> : vector<8x128xf32>
    %24 = tpu.matmul %20, %13, %cst_20 {dimension_numbers = #tpu.dot_dimension_numbers<[1], [0], [0], [1], [0, 0, 1, 1], [], []>} : vector<8x128xf32>, vector<128x128xf32>, vector<8x128xf32> -> vector<8x128xf32>
    %25 = arith.addf %23, %24 : vector<8x128xf32>
    %26 = math.tanh %25 : vector<8x128xf32>
    %c2_i32 = arith.constant 2 : i32
    %27 = arith.index_cast %c2_i32 : i32 to index
    %c0_21 = arith.constant 0 : index
    %c0_22 = arith.constant 0 : index
    %28 = vector.load %arg12[%27, %c0_21, %c0_22] : memref<8x8x128xf32, #tpu.memory_space<vmem>>, vector<1x8x128xf32>
    %29 = vector.shape_cast %28 : vector<1x8x128xf32> to vector<8x128xf32>
    %cst_23 = arith.constant dense<0.000000e+00> : vector<8x128xf32>
    %30 = tpu.matmul %26, %13, %cst_23 {dimension_numbers = #tpu.dot_dimension_numbers<[1], [0], [0], [1], [0, 0, 1, 1], [], []>} : vector<8x128xf32>, vector<128x128xf32>, vector<8x128xf32> -> vector<8x128xf32>
    %31 = arith.addf %29, %30 : vector<8x128xf32>
    %32 = math.tanh %31 : vector<8x128xf32>
    %c3_i32 = arith.constant 3 : i32
    %33 = arith.index_cast %c3_i32 : i32 to index
    %c0_24 = arith.constant 0 : index
    %c0_25 = arith.constant 0 : index
    %34 = vector.load %arg12[%33, %c0_24, %c0_25] : memref<8x8x128xf32, #tpu.memory_space<vmem>>, vector<1x8x128xf32>
    %35 = vector.shape_cast %34 : vector<1x8x128xf32> to vector<8x128xf32>
    %cst_26 = arith.constant dense<0.000000e+00> : vector<8x128xf32>
    %36 = tpu.matmul %32, %13, %cst_26 {dimension_numbers = #tpu.dot_dimension_numbers<[1], [0], [0], [1], [0, 0, 1, 1], [], []>} : vector<8x128xf32>, vector<128x128xf32>, vector<8x128xf32> -> vector<8x128xf32>
    %37 = arith.addf %35, %36 : vector<8x128xf32>
    %38 = math.tanh %37 : vector<8x128xf32>
    %c4_i32 = arith.constant 4 : i32
    %39 = arith.index_cast %c4_i32 : i32 to index
    %c0_27 = arith.constant 0 : index
    %c0_28 = arith.constant 0 : index
    %40 = vector.load %arg12[%39, %c0_27, %c0_28] : memref<8x8x128xf32, #tpu.memory_space<vmem>>, vector<1x8x128xf32>
    %41 = vector.shape_cast %40 : vector<1x8x128xf32> to vector<8x128xf32>
    %cst_29 = arith.constant dense<0.000000e+00> : vector<8x128xf32>
    %42 = tpu.matmul %38, %13, %cst_29 {dimension_numbers = #tpu.dot_dimension_numbers<[1], [0], [0], [1], [0, 0, 1, 1], [], []>} : vector<8x128xf32>, vector<128x128xf32>, vector<8x128xf32> -> vector<8x128xf32>
    %43 = arith.addf %41, %42 : vector<8x128xf32>
    %44 = math.tanh %43 : vector<8x128xf32>
    %c5_i32 = arith.constant 5 : i32
    %45 = arith.index_cast %c5_i32 : i32 to index
    %c0_30 = arith.constant 0 : index
    %c0_31 = arith.constant 0 : index
    %46 = vector.load %arg12[%45, %c0_30, %c0_31] : memref<8x8x128xf32, #tpu.memory_space<vmem>>, vector<1x8x128xf32>
    %47 = vector.shape_cast %46 : vector<1x8x128xf32> to vector<8x128xf32>
    %cst_32 = arith.constant dense<0.000000e+00> : vector<8x128xf32>
    %48 = tpu.matmul %44, %13, %cst_32 {dimension_numbers = #tpu.dot_dimension_numbers<[1], [0], [0], [1], [0, 0, 1, 1], [], []>} : vector<8x128xf32>, vector<128x128xf32>, vector<8x128xf32> -> vector<8x128xf32>
    %49 = arith.addf %47, %48 : vector<8x128xf32>
    %50 = math.tanh %49 : vector<8x128xf32>
    %c6_i32 = arith.constant 6 : i32
    %51 = arith.index_cast %c6_i32 : i32 to index
    %c0_33 = arith.constant 0 : index
    %c0_34 = arith.constant 0 : index
    %52 = vector.load %arg12[%51, %c0_33, %c0_34] : memref<8x8x128xf32, #tpu.memory_space<vmem>>, vector<1x8x128xf32>
    %53 = vector.shape_cast %52 : vector<1x8x128xf32> to vector<8x128xf32>
    %cst_35 = arith.constant dense<0.000000e+00> : vector<8x128xf32>
    %54 = tpu.matmul %50, %13, %cst_35 {dimension_numbers = #tpu.dot_dimension_numbers<[1], [0], [0], [1], [0, 0, 1, 1], [], []>} : vector<8x128xf32>, vector<128x128xf32>, vector<8x128xf32> -> vector<8x128xf32>
    %55 = arith.addf %53, %54 : vector<8x128xf32>
    %56 = math.tanh %55 : vector<8x128xf32>
    %c7_i32 = arith.constant 7 : i32
    %57 = arith.index_cast %c7_i32 : i32 to index
    %c0_36 = arith.constant 0 : index
    %c0_37 = arith.constant 0 : index
    %58 = vector.load %arg12[%57, %c0_36, %c0_37] : memref<8x8x128xf32, #tpu.memory_space<vmem>>, vector<1x8x128xf32>
    %59 = vector.shape_cast %58 : vector<1x8x128xf32> to vector<8x128xf32>
    %cst_38 = arith.constant dense<0.000000e+00> : vector<8x128xf32>
    %60 = tpu.matmul %56, %13, %cst_38 {dimension_numbers = #tpu.dot_dimension_numbers<[1], [0], [0], [1], [0, 0, 1, 1], [], []>} : vector<8x128xf32>, vector<128x128xf32>, vector<8x128xf32> -> vector<8x128xf32>
    %61 = arith.addf %59, %60 : vector<8x128xf32>
    %62 = math.tanh %61 : vector<8x128xf32>
    %c8_i32 = arith.constant 8 : i32
    %c0_39 = arith.constant 0 : index
    %c0_40 = arith.constant 0 : index
    %63 = vector.load %arg11[%c0_39, %c0_40] : memref<8x128xf32, #tpu.memory_space<vmem>>, vector<8x128xf32>
    tpu.vector_store %arg11[%c0_39, %c0_40], %62 {strides = array<i32>} : memref<8x128xf32, #tpu.memory_space<vmem>>, vector<8x128xf32>,
    %c0_i32_41 = arith.constant 0 : i32
    %64 = arith.cmpi eq, %arg1, %c0_i32_41 : i32
    %65 = arith.extui %64 : i1 to i32
    %c0_i32_42 = arith.constant 0 : i32
    %66 = arith.cmpi ne, %65, %c0_i32_42 : i32
    scf.if %66 {
      %c0_43 = arith.constant 0 : index
      %c0_44 = arith.constant 0 : index
      %67 = vector.load %arg10[%c0_43, %c0_44] : memref<8x128xf32, #tpu.memory_space<vmem>>, vector<8x128xf32>
      tpu.vector_store %arg10[%c0_43, %c0_44], %62 {strides = array<i32>} : memref<8x128xf32, #tpu.memory_space<vmem>>, vector<8x128xf32>,
      %c0_45 = arith.constant 0 : index
      %c0_46 = arith.constant 0 : index
      %68 = vector.load %arg7[%c0_45, %c0_46] : memref<128x128xf32, #tpu.memory_space<vmem>>, vector<128x128xf32>
      %cst_47 = arith.constant dense<0.000000e+00> : vector<8x128xf32>
      %69 = tpu.matmul %62, %68, %cst_47 {dimension_numbers = #tpu.dot_dimension_numbers<[1], [0], [0], [1], [0, 0, 1, 1], [], []>} : vector<8x128xf32>, vector<128x128xf32>, vector<8x128xf32> -> vector<8x128xf32>
      %c0_48 = arith.constant 0 : index
      %c0_49 = arith.constant 0 : index
      %70 = vector.load %arg8[%c0_48, %c0_49] : memref<1x128xf32, #tpu.memory_space<vmem>>, vector<1x128xf32>
      %71 = vector.broadcast %70 : vector<1x128xf32> to vector<8x128xf32>
      %72 = arith.addf %69, %71 : vector<8x128xf32>
      %cst_50 = arith.constant dense<0xFF800000> : vector<8xf32>
      %73 = vector.multi_reduction <maximumf>, %72, %cst_50 [1] : vector<8x128xf32> to vector<8xf32>
      %74 = vector.shape_cast %73 : vector<8xf32> to vector<8x1xf32>
      %75 = vector.broadcast %74 : vector<8x1xf32> to vector<8x128xf32>
      %76 = arith.subf %72, %75 : vector<8x128xf32>
      %77 = math.exp %76 : vector<8x128xf32>
      %cst_51 = arith.constant dense<0.000000e+00> : vector<8xf32>
      %78 = vector.multi_reduction <add>, %77, %cst_51 [1] : vector<8x128xf32> to vector<8xf32>
      %79 = vector.shape_cast %78 : vector<8xf32> to vector<8x1xf32>
      %80 = vector.broadcast %79 : vector<8x1xf32> to vector<8x128xf32>
      %81 = arith.divf %77, %80 : vector<8x128xf32>
      %c0_52 = arith.constant 0 : index
      %c0_53 = arith.constant 0 : index
      %82 = vector.load %arg9[%c0_52, %c0_53] : memref<8x128xf32, #tpu.memory_space<vmem>>, vector<8x128xf32>
      tpu.vector_store %arg9[%c0_52, %c0_53], %81 {strides = array<i32>} : memref<8x128xf32, #tpu.memory_space<vmem>>, vector<8x128xf32>,
    } else {
    }
    return
  }
  func.func @transform_0(%arg0: i32, %arg1: i32) -> (i32, i32, i32) {
    %c0_i32 = arith.constant 0 : i32
    %c0_i32_0 = arith.constant 0 : i32
    return %arg0, %arg1, %c0_i32 : i32, i32, i32
  }
  func.func @transform_1(%arg0: i32, %arg1: i32) -> (i32, i32) {
    %c0_i32 = arith.constant 0 : i32
    %c0_i32_0 = arith.constant 0 : i32
    return %arg0, %c0_i32 : i32, i32
  }
  func.func @transform_2(%arg0: i32, %arg1: i32) -> (i32, i32) {
    %c0_i32 = arith.constant 0 : i32
    %c0_i32_0 = arith.constant 0 : i32
    %c0_i32_1 = arith.constant 0 : i32
    return %c0_i32, %c0_i32_0 : i32, i32
  }
  func.func @transform_3(%arg0: i32, %arg1: i32) -> (i32, i32) {
    %c0_i32 = arith.constant 0 : i32
    %c0_i32_0 = arith.constant 0 : i32
    %c0_i32_1 = arith.constant 0 : i32
    return %c0_i32, %c0_i32_0 : i32, i32
  }
  func.func @transform_4(%arg0: i32, %arg1: i32) -> (i32, i32) {
    %c0_i32 = arith.constant 0 : i32
    %c0_i32_0 = arith.constant 0 : i32
    %c0_i32_1 = arith.constant 0 : i32
    return %c0_i32, %c0_i32_0 : i32, i32
  }
  func.func @transform_5(%arg0: i32, %arg1: i32) -> (i32, i32) {
    %c0_i32 = arith.constant 0 : i32
    %c0_i32_0 = arith.constant 0 : i32
    %c0_i32_1 = arith.constant 0 : i32
    return %c0_i32, %c0_i32_0 : i32, i32
  }
  func.func @transform_6(%arg0: i32, %arg1: i32) -> (i32, i32) {
    %c0_i32 = arith.constant 0 : i32
    %c0_i32_0 = arith.constant 0 : i32
    %c0_i32_1 = arith.constant 0 : i32
    return %c0_i32, %c0_i32_0 : i32, i32
  }
  func.func @transform_7(%arg0: i32, %arg1: i32) -> (i32, i32) {
    %c0_i32 = arith.constant 0 : i32
    %c0_i32_0 = arith.constant 0 : i32
    return %arg0, %c0_i32 : i32, i32
  }
  func.func @transform_8(%arg0: i32, %arg1: i32) -> (i32, i32) {
    %c0_i32 = arith.constant 0 : i32
    %c0_i32_0 = arith.constant 0 : i32
    return %arg0, %c0_i32 : i32, i32
  }
}

</mosaic_0001>

<bundles_post_ra>
// kernel: rnn_forward.1
= control target key start
LH: loop header
LB: loop body
LE: loop exit
PB: predicated region body
PF: predicated region fallthrough
CT: control target
= control target key end

     0   :  { %vm50_vm0 = vcmask 261120   ;;  %v553_v32 = vmov 1983009808   ;;  %vm117_vm1 = vcmask 1047556   ;;  %v554_v44 = vmov 1934713408   ;;  %s942_s2 = inlined_call_operand.vmem [shape: f32[32,128], index: 2, kind: input, shape index: {}]   ;;  %s943_s0 = inlined_call_operand.vmem [shape: f32[8,8,32], index: 0, kind: input, shape index: {}]   ;;  %s944_s4 = inlined_call_operand.vmem [shape: f32[1,128], index: 4, kind: input, shape index: {}]   ;;  %s945_s3 = inlined_call_operand.vmem [shape: f32[128,128], index: 3, kind: input, shape index: {}]   ;;  %s946_s1 = inlined_call_operand.vmem [shape: f32[8,128], index: 1, kind: input, shape index: {}]   ;;  %s947_s5 = inlined_call_operand.vmem [shape: f32[128,128], index: 5, kind: input, shape index: {}]   ;;  %s948_s6 = inlined_call_operand.vmem [shape: f32[1,128], index: 6, kind: input, shape index: {}]   ;;  %s949_s8 = inlined_call_operand.vmem [shape: f32[8,128], index: 8, kind: output, shape index: {1}]   ;;  %s950_s7 = inlined_call_operand.vmem [shape: f32[8,128], index: 7, kind: output, shape index: {0}]  }
   0x1   :  { %v45_v0 = vld [vmem:[%s942_s2 + $0x18] sm:$0xff]  ;;  %v44_v1 = vld [vmem:[%s942_s2 + $0x10] sm:$0xff]  ;;  %v43_v2 = vld [vmem:[%s942_s2 + $0x8] sm:$0xff]  ;;  %v122_v33 = vunpack.c.l.s4 %v553_v32  ;;  %v170_v45 = vunpack.c.l.s4 %v554_v44 }
   0x2   :  { %87 = vmatpush.msra.mxu0 %v45_v0  ;;  %v42_v3 = vld [vmem:[%s942_s2] sm:$0xff]  ;;  %v35_v5 = vld [vmem:[%s943_s0 + $0x8] sm:$0xff]  ;;  %v622_v6 = vld [vmem:[%s945_s3 + $0x78] sm:$0xff] }
   0x3   :  { %v34_v4 = vld [vmem:[%s943_s0] sm:$0xff]  ;;  %255 = vmatpush.msra.mxu1 %v622_v6  ;;  %v629_v7 = vld [vmem:[%s945_s3 + $0x70] sm:$0xff]  ;;  %v634_v8 = vld [vmem:[%s945_s3 + $0x68] sm:$0xff]  ;;  %279 = vmatpush.msra.mxu2 %v622_v6  ;;  %v123_v36 = vunpack.c.0.s8 %v122_v33  ;;  %v171_v52 = vunpack.c.0.s8 %v170_v45 }
   0x4   :  { %88 = vmatpush.msra.mxu0 %v44_v1  ;;  %303 = vmatpush.msra.mxu3 %v622_v6  ;;  %v643_v9 = vld [vmem:[%s945_s3 + $0x60] sm:$0xff]  ;;  %v36_v10 = vld [vmem:[%s943_s0 + $0x10] sm:$0xff]  ;;  %v659_v11 = vld [vmem:[%s945_s3 + $0x58] sm:$0xff] }
   0x5   :  { %256 = vmatpush.msra.mxu1 %v629_v7  ;;  %280 = vmatpush.msra.mxu2 %v629_v7  ;;  %v668_v12 = vld [vmem:[%s945_s3 + $0x50] sm:$0xff]  ;;  %v673_v13 = vld [vmem:[%s945_s3 + $0x48] sm:$0xff]  ;;  %v682_v14 = vld [vmem:[%s945_s3 + $0x40] sm:$0xff] }
   0x6   :  { %89 = vmatpush.msra.mxu0 %v43_v2  ;;  %304 = vmatpush.msra.mxu3 %v629_v7  ;;  %v37_v15 = vld [vmem:[%s943_s0 + $0x18] sm:$0xff]  ;;  %v707_v17 = vld [vmem:[%s945_s3 + $0x30] sm:$0xff]  ;;  %v712_v18 = vld [vmem:[%s945_s3 + $0x28] sm:$0xff] }
   0x7   :  { %257 = vmatpush.msra.mxu1 %v634_v8  ;;  %281 = vmatpush.msra.mxu2 %v634_v8  ;;  %v698_v16 = vld [vmem:[%s945_s3 + $0x38] sm:$0xff]  ;;  %v721_v19 = vld [vmem:[%s945_s3 + $0x20] sm:$0xff]  ;;  %v742_v22 = vld [vmem:[%s945_s3 + $0x10] sm:$0xff] }
   0x8   :  { %90 = vmatpush.msra.mxu0 %v42_v3  ;;  %305 = vmatpush.msra.mxu3 %v634_v8  ;;  %v38_v20 = vld [vmem:[%s943_s0 + $0x20] sm:$0xff]  ;;  %v733_v21 = vld [vmem:[%s945_s3 + $0x18] sm:$0xff]  ;;  %v751_v23 = vld [vmem:[%s945_s3 + $0x8] sm:$0xff] }
   0x9   :  { %521 = vmatmul.msk.f32.vlgmr.msra.gmra.mxu0 %vm50_vm0, %v34_v4  ;;  %258 = vmatpush.msra.mxu1 %v643_v9  ;;  %v760_v24 = vld [vmem:[%s945_s3] sm:$0xff]  ;;  %v39_v26 = vld [vmem:[%s943_s0 + $0x28] sm:$0xff]  ;;  %v40_v27 = vld [vmem:[%s943_s0 + $0x30] sm:$0xff] }
   0xa   :  { %399 = vmatpush.msrb.mxu0 %v622_v6  ;;  %282 = vmatpush.msra.mxu2 %v643_v9  ;;  %v32_v25 = vld [vmem:[%s946_s1] sm:$0xff]  ;;  %v41_v28 = vld [vmem:[%s943_s0 + $0x38] sm:$0xff] }
   0xb   :  { %306 = vmatpush.msra.mxu3 %v643_v9  ;;  %259 = vmatpush.msra.mxu1 %v659_v11  ;;  %v531_v31 = vld [vmem:[%s944_s4] ss:$0 sm:$0xff] }
   0xc   :  { %400 = vmatpush.msrb.mxu0 %v629_v7  ;;  %283 = vmatpush.msra.mxu2 %v659_v11 }
   0xd   :  { %307 = vmatpush.msra.mxu3 %v659_v11  ;;  %260 = vmatpush.msra.mxu1 %v668_v12 }
   0xe   :  { %401 = vmatpush.msrb.mxu0 %v634_v8  ;;  %284 = vmatpush.msra.mxu2 %v668_v12 }
   0xf   :  { %308 = vmatpush.msra.mxu3 %v668_v12  ;;  %261 = vmatpush.msra.mxu1 %v673_v13 }
  0x10   :  { %402 = vmatpush.msrb.mxu0 %v643_v9  ;;  %285 = vmatpush.msra.mxu2 %v673_v13 }
  0x11   :  { %522 = vmatmul.msk.f32.gmra.mxu0 %vm50_vm0, %v35_v5  ;;  %309 = vmatpush.msra.mxu3 %v673_v13 }
  0x12   :  { %403 = vmatpush.msrb.mxu0 %v659_v11  ;;  %262 = vmatpush.msra.mxu1 %v682_v14 }
  0x13   :  { %286 = vmatpush.msra.mxu2 %v682_v14  ;;  %310 = vmatpush.msra.mxu3 %v682_v14 }
  0x14   :  { %404 = vmatpush.msrb.mxu0 %v668_v12  ;;  %263 = vmatpush.msra.mxu1 %v698_v16 }
  0x15   :  { %287 = vmatpush.msra.mxu2 %v698_v16  ;;  %311 = vmatpush.msra.mxu3 %v698_v16 }
  0x16   :  { %264 = vmatpush.msra.mxu1 %v707_v17  ;;  %405 = vmatpush.msrb.mxu0 %v673_v13 }
  0x17   :  { %288 = vmatpush.msra.mxu2 %v707_v17  ;;  %312 = vmatpush.msra.mxu3 %v707_v17 }
  0x18   :  { %265 = vmatpush.msra.mxu1 %v712_v18  ;;  %406 = vmatpush.msrb.mxu0 %v682_v14 }
  0x19   :  { %523 = vmatmul.msk.f32.gmra.mxu0 %vm50_vm0, %v36_v10  ;;  %289 = vmatpush.msra.mxu2 %v712_v18 }
  0x1a   :  { %313 = vmatpush.msra.mxu3 %v712_v18  ;;  %266 = vmatpush.msra.mxu1 %v721_v19 }
  0x1b   :  { %407 = vmatpush.msrb.mxu0 %v698_v16  ;;  %290 = vmatpush.msra.mxu2 %v721_v19 }
  0x1c   :  { %314 = vmatpush.msra.mxu3 %v721_v19  ;;  %267 = vmatpush.msra.mxu1 %v733_v21 }
  0x1d   :  { %291 = vmatpush.msra.mxu2 %v733_v21  ;;  %408 = vmatpush.msrb.mxu0 %v707_v17 }
  0x1e   :  { %315 = vmatpush.msra.mxu3 %v733_v21  ;;  %268 = vmatpush.msra.mxu1 %v742_v22 }
  0x1f   :  { %292 = vmatpush.msra.mxu2 %v742_v22  ;;  %409 = vmatpush.msrb.mxu0 %v712_v18 }
  0x20   :  { %316 = vmatpush.msra.mxu3 %v742_v22  ;;  %269 = vmatpush.msra.mxu1 %v751_v23 }
  0x21   :  { %524 = vmatmul.msk.f32.gmra.mxu0 %vm50_vm0, %v37_v15  ;;  %293 = vmatpush.msra.mxu2 %v751_v23 }
  0x22   :  { %317 = vmatpush.msra.mxu3 %v751_v23  ;;  %270 = vmatpush.msra.mxu1 %v760_v24 }
  0x23   :  { %410 = vmatpush.msrb.mxu0 %v721_v19  ;;  %271 = vmatmul.f32.vlgmr.msra.gmra.mxu1 %v32_v25 }
  0x24   :  { %294 = vmatpush.msra.mxu2 %v760_v24  ;;  %318 = vmatpush.msra.mxu3 %v760_v24 }
  0x25   :  { %327 = vmatpush.msrb.mxu1 %v622_v6  ;;  %411 = vmatpush.msrb.mxu0 %v733_v21 }
  0x26   :  { %351 = vmatpush.msrb.mxu2 %v622_v6  ;;  %375 = vmatpush.msrb.mxu3 %v622_v6 }
  0x27   :  { %328 = vmatpush.msrb.mxu1 %v629_v7  ;;  %412 = vmatpush.msrb.mxu0 %v742_v22 }
  0x28   :  { %352 = vmatpush.msrb.mxu2 %v629_v7  ;;  %376 = vmatpush.msrb.mxu3 %v629_v7 }
  0x29   :  { %525 = vmatmul.msk.f32.gmra.mxu0 %vm50_vm0, %v38_v20  ;;  %329 = vmatpush.msrb.mxu1 %v634_v8 }
  0x2a   :  { %353 = vmatpush.msrb.mxu2 %v634_v8  ;;  %377 = vmatpush.msrb.mxu3 %v634_v8 }
  0x2b   :  { %413 = vmatpush.msrb.mxu0 %v751_v23  ;;  %330 = vmatpush.msrb.mxu1 %v643_v9 }
  0x2c   :  { %354 = vmatpush.msrb.mxu2 %v643_v9  ;;  %378 = vmatpush.msrb.mxu3 %v643_v9 }
  0x2d   :  { %331 = vmatpush.msrb.mxu1 %v659_v11  ;;  %414 = vmatpush.msrb.mxu0 %v760_v24 }
  0x2e   :  { %355 = vmatpush.msrb.mxu2 %v659_v11  ;;  %379 = vmatpush.msrb.mxu3 %v659_v11 }
  0x2f   :  { %332 = vmatpush.msrb.mxu1 %v668_v12 }
  0x30   :  { %356 = vmatpush.msrb.mxu2 %v668_v12  ;;  %380 = vmatpush.msrb.mxu3 %v668_v12 }
  0x31   :  { %526 = vmatmul.msk.f32.gmra.mxu0 %vm50_vm0, %v39_v26  ;;  %333 = vmatpush.msrb.mxu1 %v673_v13 }
  0x32   :  { %357 = vmatpush.msrb.mxu2 %v673_v13  ;;  %381 = vmatpush.msrb.mxu3 %v673_v13 }
  0x33   :  { %334 = vmatpush.msrb.mxu1 %v682_v14 }
  0x34   :  { %358 = vmatpush.msrb.mxu2 %v682_v14  ;;  %382 = vmatpush.msrb.mxu3 %v682_v14 }
  0x35   :  { %335 = vmatpush.msrb.mxu1 %v698_v16 }
  0x36   :  { %359 = vmatpush.msrb.mxu2 %v698_v16  ;;  %383 = vmatpush.msrb.mxu3 %v698_v16 }
  0x37   :  { %336 = vmatpush.msrb.mxu1 %v707_v17 }
  0x38   :  { %360 = vmatpush.msrb.mxu2 %v707_v17  ;;  %384 = vmatpush.msrb.mxu3 %v707_v17 }
  0x39   :  { %527 = vmatmul.msk.f32.gmra.mxu0 %vm50_vm0, %v40_v27  ;;  %337 = vmatpush.msrb.mxu1 %v712_v18 }
  0x3a   :  { %361 = vmatpush.msrb.mxu2 %v712_v18  ;;  %385 = vmatpush.msrb.mxu3 %v712_v18 }
  0x3b   :  { %338 = vmatpush.msrb.mxu1 %v721_v19 }
  0x3c   :  { %362 = vmatpush.msrb.mxu2 %v721_v19  ;;  %386 = vmatpush.msrb.mxu3 %v721_v19 }
  0x3d   :  { %339 = vmatpush.msrb.mxu1 %v733_v21 }
  0x3e   :  { %363 = vmatpush.msrb.mxu2 %v733_v21  ;;  %387 = vmatpush.msrb.mxu3 %v733_v21 }
  0x3f   :  { %340 = vmatpush.msrb.mxu1 %v742_v22 }
  0x40   :  { %364 = vmatpush.msrb.mxu2 %v742_v22  ;;  %388 = vmatpush.msrb.mxu3 %v742_v22 }
  0x41   :  { %528 = vmatmul.msk.f32.gmra.mxu0 %vm50_vm0, %v41_v28  ;;  %341 = vmatpush.msrb.mxu1 %v751_v23 }
  0x42   :  { %365 = vmatpush.msrb.mxu2 %v751_v23  ;;  %389 = vmatpush.msrb.mxu3 %v751_v23 }
  0x43   :  { %342 = vmatpush.msrb.mxu1 %v760_v24 }
  0x44   :  { %366 = vmatpush.msrb.mxu2 %v760_v24  ;;  %390 = vmatpush.msrb.mxu3 %v760_v24 }
  0x45   :  { %423 = vmatpush.msra.mxu1 %v622_v6 }
  0x47   :  { %424 = vmatpush.msra.mxu1 %v629_v7 }
  0x49   :  { %425 = vmatpush.msra.mxu1 %v634_v8 }
  0x4b   :  { %426 = vmatpush.msra.mxu1 %v643_v9 }
  0x4d   :  { %427 = vmatpush.msra.mxu1 %v659_v11 }
  0x4f   :  { %428 = vmatpush.msra.mxu1 %v668_v12 }
  0x51   :  { %429 = vmatpush.msra.mxu1 %v673_v13 }
  0x53   :  { %430 = vmatpush.msra.mxu1 %v682_v14 }
  0x55   :  { %431 = vmatpush.msra.mxu1 %v698_v16 }
  0x57   :  { %432 = vmatpush.msra.mxu1 %v707_v17 }
  0x59   :  { %433 = vmatpush.msra.mxu1 %v712_v18 }
  0x5b   :  { %434 = vmatpush.msra.mxu1 %v721_v19 }
  0x5d   :  { %435 = vmatpush.msra.mxu1 %v733_v21 }
  0x5f   :  { %436 = vmatpush.msra.mxu1 %v742_v22 }
  0x61   :  { %437 = vmatpush.msra.mxu1 %v751_v23 }
  0x63   :  { %438 = vmatpush.msra.mxu1 %v760_v24 }
  0x86   :  { %v92_v29 = vpop.f32.mrf.mxu0 }
  0x87   :  { %v93_v34 = vadd.f32 %v531_v31, %v92_v29 }
  0x89   :  { %v119_v37 = vrot.slane %v93_v34, 4 }
  0x8e   :  { %v95_v30 = vpop.f32.mrf.mxu0 }
  0x8f   :  { %v96_v42 = vadd.f32 %v531_v31, %v95_v30 }
  0x91   :  { %v131_v47 = vrot.slane %v96_v42, 4 }
  0x96   :  { %v98_v35 = vpop.f32.mrf.mxu0 }
  0x97   :  { %v99_v38 = vadd.f32 %v531_v31, %v98_v35 }
  0x99   :  { %v116_v39 = vrot.slane %v99_v38, 4  ;;  %v120_v40 = vsel %vm117_vm1, %v99_v38, %v119_v37 }
  0x9a   :  { %v128_v41 = vperm.slane %v120_v40, %v123_v36 }
  0x9b   :  { %v118_v43 = vsel %vm117_vm1, %v116_v39, %v93_v34 }
  0x9c   :  { %v124_v49 = vperm.slane %v118_v43, %v123_v36  ;;  %v179_v53 = vrot.slane %v128_v41, 4 }
  0x9e   :  { %v101_v46 = vpop.f32.mrf.mxu0  ;;  %v167_v56 = vrot.slane %v124_v49, 4 }
  0x9f   :  { %v102_v48 = vadd.f32 %v531_v31, %v101_v46 }
  0xa1   :  { %v129_v50 = vrot.slane %v102_v48, 4  ;;  %v132_v51 = vsel %vm117_vm1, %v102_v48, %v131_v47  ;;  %v272_v48 = vpop.f32.mrf.mxu1 }
  0xa2   :  { %v140_v54 = vperm.slane %v132_v51, %v123_v36 }
  0xa3   :  { %v130_v55 = vsel %vm117_vm1, %v129_v50, %v96_v42 }
  0xa4   :  { %v136_v57 = vperm.slane %v130_v55, %v123_v36  ;;  %v177_v58 = vrot.slane %v140_v54, 4  ;;  %v180_v59 = vsel %vm117_vm1, %v140_v54, %v179_v53 }
  0xa5   :  { %v188_v60 = vperm.slane %v180_v59, %v171_v52 }
  0xa6   :  { %v104_v61 = vpop.f32.mrf.mxu0  ;;  %v168_v62 = vsel %vm117_vm1, %v136_v57, %v167_v56  ;;  %v178_v63 = vsel %vm117_vm1, %v177_v58, %v128_v41  ;;  %v165_v11 = vrot.slane %v136_v57, 4 }
  0xa7   :  { %v176_v0 = vperm.slane %v168_v62, %v171_v52  ;;  %v184_v1 = vperm.slane %v178_v63, %v171_v52  ;;  %v105_v3 = vadd.f32 %v531_v31, %v104_v61  ;;  %v227_v29 = vrot.slane %v188_v60, 4 }
  0xa8   :  { %v166_v17 = vsel %vm117_vm1, %v165_v11, %v124_v49  ;;  %v460_v11 = vld [vmem:[%s947_s5 + $0x50] sm:$0xff] }
  0xa9   :  { %v143_v5 = vrot.slane %v105_v3, 4  ;;  %v172_v23 = vperm.slane %v166_v17, %v171_v52  ;;  %v219_v32 = vrot.slane %v176_v0, 4  ;;  %v223_v40 = vrot.slane %v184_v1, 4 }
  0xae   :  { %v107_v2 = vpop.f32.mrf.mxu0 }
  0xaf   :  { %v108_v10 = vadd.f32 %v531_v31, %v107_v2 }
  0xb1   :  { %v155_v14 = vrot.slane %v108_v10, 4 }
  0xb6   :  { %v110_v4 = vpop.f32.mrf.mxu0 }
  0xb7   :  { %v111_v6 = vadd.f32 %v531_v31, %v110_v4 }
  0xb9   :  { %v141_v7 = vrot.slane %v111_v6, 4  ;;  %v144_v8 = vsel %vm117_vm1, %v111_v6, %v143_v5  ;;  %v465_v6 = vld [vmem:[%s947_s5 + $0x78] sm:$0xff] }
  0xba   :  { %v152_v9 = vperm.slane %v144_v8, %v123_v36  ;;  %v463_v8 = vld [vmem:[%s947_s5 + $0x68] sm:$0xff] }
  0xbb   :  { %v142_v12 = vsel %vm117_vm1, %v141_v7, %v105_v3  ;;  %v464_v7 = vld [vmem:[%s947_s5 + $0x70] sm:$0xff] }
  0xbc   :  { %v148_v16 = vperm.slane %v142_v12, %v123_v36  ;;  %v203_v20 = vrot.slane %v152_v9, 4  ;;  %v459_v12 = vld [vmem:[%s947_s5 + $0x48] sm:$0xff] }
  0xbe   :  { %v113_v13 = vpop.f32.mrf.mxu0  ;;  %v191_v24 = vrot.slane %v148_v16, 4 }
  0xbf   :  { %v114_v15 = vadd.f32 %v531_v31, %v113_v13  ;;  %v458_v13 = vld [vmem:[%s947_s5 + $0x40] sm:$0xff] }
  0xc1   :  { %v153_v18 = vrot.slane %v114_v15, 4  ;;  %v156_v19 = vsel %vm117_vm1, %v114_v15, %v155_v14  ;;  %v457_v14 = vld [vmem:[%s947_s5 + $0x38] sm:$0xff]  ;;  %v456_v15 = vld [vmem:[%s947_s5 + $0x30] sm:$0xff] }
  0xc2   :  { %v164_v21 = vperm.slane %v156_v19, %v123_v36 }
  0xc3   :  { %v154_v22 = vsel %vm117_vm1, %v153_v18, %v108_v10  ;;  %v461_v10 = vld [vmem:[%s947_s5 + $0x58] sm:$0xff] }
  0xc4   :  { %v160_v25 = vperm.slane %v154_v22, %v123_v36  ;;  %v201_v26 = vrot.slane %v164_v21, 4  ;;  %v204_v27 = vsel %vm117_vm1, %v164_v21, %v203_v20  ;;  %v215_v36 = vrot.slane %v172_v23, 4  ;;  %v454_v20 = vld [vmem:[%s947_s5 + $0x20] sm:$0xff]  ;;  %v453_v21 = vld [vmem:[%s947_s5 + $0x18] sm:$0xff]  ;;  %v452_v22 = vld [vmem:[%s947_s5 + $0x10] sm:$0xff] }
  0xc5   :  { %v212_v28 = vperm.slane %v204_v27, %v171_v52 }
  0xc6   :  { %v189_v30 = vrot.slane %v160_v25, 4  ;;  %v192_v31 = vsel %vm117_vm1, %v160_v25, %v191_v24  ;;  %v202_v33 = vsel %vm117_vm1, %v201_v26, %v152_v9  ;;  %v462_v9 = vld [vmem:[%s947_s5 + $0x60] sm:$0xff] }
  0xc7   :  { %v200_v34 = vperm.slane %v192_v31, %v171_v52  ;;  %v208_v35 = vperm.slane %v202_v33, %v171_v52  ;;  %v225_v37 = vrot.slane %v212_v28, 4  ;;  %v874_v38 = vsel %vm117_vm1, %v212_v28, %v227_v29  ;;  %v450_v24 = vld [vmem:[%s947_s5] sm:$0xff] }
  0xc8   :  { %v190_v39 = vsel %vm117_vm1, %v189_v30, %v148_v16  ;;  %v455_v16 = vld [vmem:[%s947_s5 + $0x28] sm:$0xff]  ;;  %v532_v28 = vld [vmem:[%s948_s6] ss:$0 sm:$0xff] }
  0xc9   :  { %v196_v41 = vperm.slane %v190_v39, %v171_v52  ;;  %v217_v42 = vrot.slane %v200_v34, 4  ;;  %v220_v43 = vsel %vm117_vm1, %v200_v34, %v219_v32  ;;  %v221_v44 = vrot.slane %v208_v35, 4 }
  0xca   :  { %v224_v45 = vsel %vm117_vm1, %v208_v35, %v223_v40  ;;  %v226_v46 = vsel %vm117_vm1, %v225_v37, %v188_v60 }
  0xcb   :  { %v213_v47 = vrot.slane %v196_v41, 4  ;;  %v216_v49 = vsel %vm117_vm1, %v196_v41, %v215_v36  ;;  %v218_v50 = vsel %vm117_vm1, %v217_v42, %v176_v0  ;;  %v222_v51 = vsel %vm117_vm1, %v221_v44, %v184_v1 }
  0xcd   :  { %v214_v53 = vsel %vm117_vm1, %v213_v47, %v172_v23  ;;  %v451_v23 = vld [vmem:[%s947_s5 + $0x8] sm:$0xff] }
  0xce   :  { %v275_v54 = vadd.f32 %v272_v48, %v214_v53 }
  0xd0   :  { %533 = vtanh.f32 %v275_v54 }
  0xd6   :  { %v534_v52 = vpop.eup %533 }
  0xd7   :  { %295 = vmatmul.f32.vlgmr.msra.gmra.mxu2 %v534_v52 }
  0xd8   :  { %470 = vmatpush.msra.mxu2 %v465_v6 }
  0xda   :  { %471 = vmatpush.msra.mxu2 %v464_v7 }
  0xdc   :  { %472 = vmatpush.msra.mxu2 %v463_v8 }
  0xde   :  { %473 = vmatpush.msra.mxu2 %v462_v9 }
  0xe0   :  { %474 = vmatpush.msra.mxu2 %v461_v10 }
  0xe2   :  { %475 = vmatpush.msra.mxu2 %v460_v11 }
  0xe4   :  { %476 = vmatpush.msra.mxu2 %v459_v12 }
  0xe6   :  { %477 = vmatpush.msra.mxu2 %v458_v13 }
  0xe8   :  { %478 = vmatpush.msra.mxu2 %v457_v14 }
  0xea   :  { %479 = vmatpush.msra.mxu2 %v456_v15 }
  0xec   :  { %480 = vmatpush.msra.mxu2 %v455_v16 }
  0xee   :  { %481 = vmatpush.msra.mxu2 %v454_v20 }
  0xf0   :  { %482 = vmatpush.msra.mxu2 %v453_v21 }
  0xf2   :  { %483 = vmatpush.msra.mxu2 %v452_v22 }
  0xf4   :  { %484 = vmatpush.msra.mxu2 %v451_v23 }
  0xf6   :  { %485 = vmatpush.msra.mxu2 %v450_v24 }
 0x15a   :  { %v296_v55 = vpop.f32.mrf.mxu2 }
 0x15b   :  { %v299_v56 = vadd.f32 %v296_v55, %v216_v49 }
 0x15d   :  { %535 = vtanh.f32 %v299_v56 }
 0x163   :  { %v536_v57 = vpop.eup %535 }
 0x164   :  { %319 = vmatmul.f32.vlgmr.msra.gmra.mxu3 %v536_v57 }
 0x1e7   :  { %v320_v58 = vpop.f32.mrf.mxu3 }
 0x1e8   :  { %v323_v59 = vadd.f32 %v320_v58, %v218_v50 }
 0x1ea   :  { %537 = vtanh.f32 %v323_v59 }
 0x1f0   :  { %v538_v60 = vpop.eup %537 }
 0x1f1   :  { %343 = vmatmul.f32.vlgmr.msrb.gmra.mxu1 %v538_v60 }
 0x26e   :  { %v344_v61 = vpop.f32.mrf.mxu1 }
 0x26f   :  { %v347_v62 = vadd.f32 %v344_v61, %v220_v43 }
 0x271   :  { %539 = vtanh.f32 %v347_v62 }
 0x277   :  { %v540_v63 = vpop.eup %539 }
 0x278   :  { %367 = vmatmul.f32.vlgmr.msrb.gmra.mxu2 %v540_v63 }
 0x2fb   :  { %v368_v0 = vpop.f32.mrf.mxu2 }
 0x2fc   :  { %v371_v1 = vadd.f32 %v368_v0, %v222_v51 }
 0x2fe   :  { %541 = vtanh.f32 %v371_v1 }
 0x304   :  { %v542_v2 = vpop.eup %541 }
 0x305   :  { %391 = vmatmul.f32.vlgmr.msrb.gmra.mxu3 %v542_v2 }
 0x388   :  { %v392_v3 = vpop.f32.mrf.mxu3 }
 0x389   :  { %v395_v4 = vadd.f32 %v392_v3, %v224_v45 }
 0x38b   :  { %543 = vtanh.f32 %v395_v4 }
 0x391   :  { %v544_v5 = vpop.eup %543 }
 0x392   :  { %415 = vmatmul.f32.vlgmr.msrb.gmra.mxu0 %v544_v5 }
 0x40f   :  { %v416_v17 = vpop.f32.mrf.mxu0 }
 0x410   :  { %v419_v18 = vadd.f32 %v416_v17, %v226_v46 }
 0x412   :  { %545 = vtanh.f32 %v419_v18 }
 0x418   :  { %v546_v19 = vpop.eup %545 }
 0x419   :  { %439 = vmatmul.f32.vlgmr.msra.gmra.mxu1 %v546_v19 }
 0x496   :  { %v440_v25 = vpop.f32.mrf.mxu1 }
 0x497   :  { %v443_v26 = vadd.f32 %v440_v25, %v874_v38 }
 0x499   :  { %547 = vtanh.f32 %v443_v26 }
 0x49f   :  { %v548_v27 = vpop.eup %547 }
 0x4a0   :  { %449 = vst [vmem:[%s949_s8] sm:$0xff] %v548_v27  ;;  %486 = vmatmul.f32.vlgmr.msra.gmra.mxu2 %v548_v27 }
 0x523   :  { %v487_v29 = vpop.f32.mrf.mxu2 }
 0x524   :  { %v488_v30 = vadd.f32 %v532_v28, %v487_v29 }
 0x526   :  { %490 = vmax.xlane.f32.xlu0 %v488_v30 }
 0x599   :  { %v491_v31 = vpop.xlane.xlu0 %490 }
 0x59a   :  { %v492_v32 = vsub.f32 %v488_v30, %v491_v31 }
 0x59c   :  { %v493_v33 = vmul.f32 1.442695, %v492_v32 }
 0x59e   :  { %549 = vpow2.f32 %v493_v33 }
 0x5a4   :  { %v550_v34 = vpop.eup %549 }
 0x5a5   :  { %495 = vadd.xlane.f32.xlu0 %v550_v34 }
 0x618   :  { %v496_v35 = vpop.xlane.xlu0 %495 }
 0x619   :  { %551 = vrcp.f32 %v496_v35  ;;  %v508_v36 = vand.u32 2147483648, %v496_v35  ;;  %v506_v41 = vand.u32 2147483647, %v496_v35  ;;  %vm502_vm3 = vweird.f32 %v496_v35 }
 0x61b   :  { %v509_v43 = vor.u32 1.1754944e-38, %v508_v36  ;;  %vm507_vm5 = vcmp.eq.f32.partialorder %v506_v41, 8.507059e+37 }
 0x61f   :  { %v552_v37 = vpop.eup %551 }
 0x620   :  { %v498_v38 = vmul.f32 %v552_v37, %v496_v35  ;;  %vm503_vm2 = vweird.f32 %v552_v37 }
 0x621   :  { %vm504_vm4 = vmor %vm502_vm3, %vm503_vm2 }
 0x622   :  { %v499_v39 = vsub.f32 1.0, %v498_v38 }
 0x624   :  { %v500_v40 = vmul.f32 %v552_v37, %v499_v39 }
 0x626   :  { %v501_v42 = vadd.f32 %v552_v37, %v500_v40 }
 0x628   :  { %v505_v44 = vsel %vm504_vm4, %v552_v37, %v501_v42 }
 0x629   :  { %v510_v45 = vsel %vm507_vm5, %v509_v43, %v505_v44 }
 0x62a   :  { %v511_v46 = vmul.f32 %v550_v34, %v510_v45 }
 0x62c   :  { %512 = vst [vmem:[%s950_s7] sm:$0xff] %v511_v46 }

</bundles_post_ra>
